<compile_context>
chip_gen: v5e
topology: v5e:2x2
jax: 0.10.0
libtpu: 0.0.40
codegen_flags: <defaults>
</compile_context>

<pallas_src>
import jax
import jax.numpy as jnp
from jax.experimental import pallas as pl
from jax.experimental.pallas import tpu as pltpu

# ----------------------------- problem sizes --------------------------------
B = 2                       # batch
C_IN = 4                    # input channels
H = W_SP = 16               # spatial
D_FLAT = C_IN * H * W_SP    # 1024 flattened features per image
LAT = 512                   # latent width of model1 / model2 (model3 -> 1)
NUM_CLASSES = 8             # fc output classes
FC_IN = 2 * LAT + 1         # 1025, as in nn.Linear(512*2 + 1, num_classes)

K_PAD = 128                 # pad class dim to one full lane width


# --------------------------- fused Pallas kernel -----------------------------
def _fused_kernel(x1_ref, x2_ref, x3_ref, wf_ref, w3_ref, aux_ref, o_ref):
    f32 = jnp.float32

    # In-kernel f32 -> bf16 cast (VPU, hidden under the weight DMA), then one
    # MXU pass over the merged, fc-folded weight slab [w1@fw1; w2@fw2].
    x12 = jnp.concatenate([x1_ref[...], x2_ref[...]], axis=-1)       # (B, 2048) f32
    acc = jnp.dot(x12.astype(jnp.bfloat16), wf_ref[...],
                  preferred_element_type=f32)                         # (B, K_PAD) f32

    # model3 "latent" (one scalar per row): VPU multiply + XLU lane reduction
    # against a lane-dense (1, 1024) w3 row (replaces the degenerate (1024, 1)
    # MXU operand).  Bias b3's contribution is folded into the final bias.
    s3 = jnp.sum(x3_ref[...] * w3_ref[...], axis=-1, keepdims=True)   # (B, 1) f32

    # NOTE: `latent_vector.squeeze()` in the PyTorch forward discards its
    # result, so it is a no-op and intentionally omitted.

    fw3 = aux_ref[0:1, :]     # fc weight row for the model3 latent   (1, K_PAD)
    bias = aux_ref[1:2, :]    # folded bias b1@fw1 + b2@fw2 + b3*fw3 + fc_b
    o_ref[...] = acc + s3 * fw3 + bias                                # (B, K_PAD) f32


def _full_spec(shape):
    return pl.BlockSpec(shape, lambda i: (0, 0))


def fused_forward_call(f1, f2, f3, p):
    """f1/f2/f3: (B, D_FLAT) f32; p: prepared params -> (B, K_PAD) f32."""
    in_specs = [
        _full_spec((B, D_FLAT)),          # x1 (f32, cast in-kernel)
        _full_spec((B, D_FLAT)),          # x2
        _full_spec((B, D_FLAT)),          # x3
        _full_spec((2 * D_FLAT, K_PAD)),  # [w1@fw1 ; w2@fw2] slab (bf16)
        _full_spec((1, D_FLAT)),          # w3 row, lane-dense (f32)
        _full_spec((2, K_PAD)),           # [fc_w row 1024 ; folded bias] (f32)
    ]
    return pl.pallas_call(
        _fused_kernel,
        out_shape=jax.ShapeDtypeStruct((B, K_PAD), jnp.float32),
        grid=(1,),
        in_specs=in_specs,
        out_specs=_full_spec((B, K_PAD)),
        compiler_params=pltpu.CompilerParams(
            dimension_semantics=("arbitrary",),
        ),
    )(f1, f2, f3, p["wf"], p["w3row"], p["aux"])


# --------------------------- parameter setup --------------------------------
def _init_linear(key, fan_in, fan_out):
    # PyTorch nn.Linear default: U(-1/sqrt(fan_in), 1/sqrt(fan_in)).
    kw, kb = jax.random.split(key)
    bound = 1.0 / jnp.sqrt(jnp.float32(fan_in))
    w = jax.random.uniform(kw, (fan_in, fan_out), jnp.float32, -bound, bound)
    b = jax.random.uniform(kb, (1, fan_out), jnp.float32, -bound, bound)
    return w, b


def init_raw_params(key):
    k1, k2, k3, k4 = jax.random.split(key, 4)
    w1, b1 = _init_linear(k1, D_FLAT, LAT)              # synthetic model1
    w2, b2 = _init_linear(k2, D_FLAT, LAT)              # synthetic model2
    w3, b3 = _init_linear(k3, D_FLAT, 1)                # synthetic model3
    fc_w, fc_b = _init_linear(k4, FC_IN, NUM_CLASSES)   # self.fc
    return dict(w1=w1, b1=b1, w2=w2, b2=b2, w3=w3, b3=b3, fc_w=fc_w, fc_b=fc_b)


def _pad_cols(a, width):
    return jnp.pad(a, ((0, 0), (0, width - a.shape[1])))


def prepare_params(raw):
    """Offline fc-folding + operand consolidation.

    Since the synthetic encoders are linear, (x@w + b)@fw == x@(w@fw) + b@fw,
    so fc is folded into the encoder weights and all biases collapse into one
    (1, K_PAD) row.  Result: one bf16 weight slab, one f32 lane-dense w3 row,
    one f32 aux slab.
    """
    fc_w, fc_b = raw["fc_w"], raw["fc_b"]                # (1025, K), (1, K)
    fw1 = fc_w[0:LAT, :]                                 # (512, K)
    fw2 = fc_w[LAT:2 * LAT, :]                           # (512, K)
    fw3 = fc_w[2 * LAT:2 * LAT + 1, :]                   # (1, K)

    w1f = raw["w1"] @ fw1                                # (1024, K) f32
    w2f = raw["w2"] @ fw2                                # (1024, K) f32
    bias = raw["b1"] @ fw1 + raw["b2"] @ fw2 + raw["b3"] * fw3 + fc_b   # (1, K)

    wf = _pad_cols(jnp.concatenate([w1f, w2f], axis=0), K_PAD)          # (2048, K_PAD)
    aux = jnp.concatenate([_pad_cols(fw3, K_PAD), _pad_cols(bias, K_PAD)], axis=0)

    return dict(
        wf=wf.astype(jnp.bfloat16),      # (2048, K_PAD) bf16 MXU slab
        w3row=raw["w3"].T,               # (1, D_FLAT)  f32, lane-dense
        aux=aux,                         # (2, K_PAD)   f32
    )


# ------------------------------ forward -------------------------------------
@jax.jit
def combined_unet_forward(prep, x1, x2, x3):
    # NCHW -> (B, C*H*W): free contiguous reshape (matches torch.flatten).
    f1 = x1.reshape(x1.shape[0], -1)
    f2 = x2.reshape(x2.shape[0], -1)
    f3 = x3.reshape(x3.shape[0], -1)
    out_padded = fused_forward_call(f1, f2, f3, prep)    # (B, K_PAD) f32
    return out_padded[:, :NUM_CLASSES]


def combined_unet_reference(prep, x1, x2, x3):
    """Pure-JAX reference mirroring the kernel's folded bf16/f32 precision."""
    f32 = jnp.float32
    hp = jax.lax.Precision.HIGHEST
    f1 = x1.reshape(B, -1).astype(jnp.bfloat16).astype(f32)
    f2 = x2.reshape(B, -1).astype(jnp.bfloat16).astype(f32)
    f3 = x3.reshape(B, -1)
    wf = prep["wf"].astype(f32)
    acc = jnp.dot(jnp.concatenate([f1, f2], axis=-1), wf, precision=hp)
    s3 = jnp.sum(f3 * prep["w3row"], axis=-1, keepdims=True)
    out = acc + s3 * prep["aux"][0:1, :] + prep["aux"][1:2, :]
    return out[:, :NUM_CLASSES]


# -------------------------------- main ---------------------------------------
if __name__ == "__main__":
    key = jax.random.PRNGKey(0)
    kp, kx1, kx2, kx3 = jax.random.split(key, 4)
    raw = init_raw_params(kp)
    prep = prepare_params(raw)

    x1 = jax.random.normal(kx1, (B, C_IN, H, W_SP), jnp.float32)
    x2 = jax.random.normal(kx2, (B, C_IN, H, W_SP), jnp.float32)
    x3 = jax.random.normal(kx3, (B, C_IN, H, W_SP), jnp.float32)

    out = combined_unet_forward(prep, x1, x2, x3)
    out = jax.block_until_ready(out)

    ref = combined_unet_reference(prep, x1, x2, x3)
    assert out.shape == (B, NUM_CLASSES), out.shape
    assert jnp.allclose(out, ref, rtol=1e-3, atol=1e-3), (
        "Pallas output mismatch vs reference"
    )
    print("KERNEL_OK")
</pallas_src>

<mosaic_0001>
module attributes {stable_mosaic.version = 11 : i64} {
  func.func @_fused_kernel(%arg0: i32, %arg1: memref<2x1024xf32, #tpu.memory_space<vmem>>, %arg2: memref<2x1024xf32, #tpu.memory_space<vmem>>, %arg3: memref<2x1024xf32, #tpu.memory_space<vmem>>, %arg4: memref<2048x128xbf16, #tpu.memory_space<vmem>>, %arg5: memref<1x1024xf32, #tpu.memory_space<vmem>>, %arg6: memref<2x128xf32, #tpu.memory_space<vmem>>, %arg7: memref<2x128xf32, #tpu.memory_space<vmem>>) attributes {dimension_semantics = [#tpu.dimension_semantics<arbitrary>], iteration_bounds = array<i64: 1>, scalar_prefetch = 0 : i64, scratch_operands = 0 : i64, tpu.core_type = #tpu.core_type<tc>, window_params = [{pipeline_mode = #tpu.pipeline_mode<synchronous>, transform_indices = @transform_0, window_bounds = array<i64: 2, 1024>}, {pipeline_mode = #tpu.pipeline_mode<synchronous>, transform_indices = @transform_1, window_bounds = array<i64: 2, 1024>}, {pipeline_mode = #tpu.pipeline_mode<synchronous>, transform_indices = @transform_2, window_bounds = array<i64: 2, 1024>}, {pipeline_mode = #tpu.pipeline_mode<synchronous>, transform_indices = @transform_3, window_bounds = array<i64: 2048, 128>}, {pipeline_mode = #tpu.pipeline_mode<synchronous>, transform_indices = @transform_4, window_bounds = array<i64: 1, 1024>}, {pipeline_mode = #tpu.pipeline_mode<synchronous>, transform_indices = @transform_5, window_bounds = array<i64: 2, 128>}, {pipeline_mode = #tpu.pipeline_mode<synchronous>, transform_indices = @transform_6, window_bounds = array<i64: 2, 128>}]} {
    %c0 = arith.constant 0 : index
    %c0_0 = arith.constant 0 : index
    %0 = vector.load %arg1[%c0, %c0_0] : memref<2x1024xf32, #tpu.memory_space<vmem>>, vector<2x1024xf32>
    %c0_1 = arith.constant 0 : index
    %c0_2 = arith.constant 0 : index
    %1 = vector.load %arg2[%c0_1, %c0_2] : memref<2x1024xf32, #tpu.memory_space<vmem>>, vector<2x1024xf32>
    %2 = tpu.concatenate %0, %1 in 1 : vector<2x1024xf32>, vector<2x1024xf32> -> vector<2x2048xf32>
    %3 = arith.truncf %2 : vector<2x2048xf32> to vector<2x2048xbf16>
    %c0_3 = arith.constant 0 : index
    %c0_4 = arith.constant 0 : index
    %4 = vector.load %arg4[%c0_3, %c0_4] : memref<2048x128xbf16, #tpu.memory_space<vmem>>, vector<2048x128xbf16>
    %cst = arith.constant dense<0.000000e+00> : vector<2x128xf32>
    %5 = tpu.matmul %3, %4, %cst {dimension_numbers = #tpu.dot_dimension_numbers<[1], [0], [0], [1], [0, 0, 1, 1], [], []>} : vector<2x2048xbf16>, vector<2048x128xbf16>, vector<2x128xf32> -> vector<2x128xf32>
    %c0_5 = arith.constant 0 : index
    %c0_6 = arith.constant 0 : index
    %6 = vector.load %arg3[%c0_5, %c0_6] : memref<2x1024xf32, #tpu.memory_space<vmem>>, vector<2x1024xf32>
    %c0_7 = arith.constant 0 : index
    %c0_8 = arith.constant 0 : index
    %7 = vector.load %arg5[%c0_7, %c0_8] : memref<1x1024xf32, #tpu.memory_space<vmem>>, vector<1x1024xf32>
    %8 = vector.broadcast %7 : vector<1x1024xf32> to vector<2x1024xf32>
    %9 = arith.mulf %6, %8 : vector<2x1024xf32>
    %cst_9 = arith.constant dense<0.000000e+00> : vector<2xf32>
    %10 = vector.multi_reduction <add>, %9, %cst_9 [1] : vector<2x1024xf32> to vector<2xf32>
    %11 = vector.shape_cast %10 : vector<2xf32> to vector<2x1xf32>
    %c0_10 = arith.constant 0 : index
    %c0_11 = arith.constant 0 : index
    %12 = vector.load %arg6[%c0_10, %c0_11] : memref<2x128xf32, #tpu.memory_space<vmem>>, vector<1x128xf32>
    %c1 = arith.constant 1 : index
    %c0_12 = arith.constant 0 : index
    %13 = vector.load %arg6[%c1, %c0_12] : memref<2x128xf32, #tpu.memory_space<vmem>>, vector<1x128xf32>
    %14 = vector.broadcast %11 : vector<2x1xf32> to vector<2x128xf32>
    %15 = vector.broadcast %12 : vector<1x128xf32> to vector<2x128xf32>
    %16 = arith.mulf %14, %15 : vector<2x128xf32>
    %17 = arith.addf %5, %16 : vector<2x128xf32>
    %18 = vector.broadcast %13 : vector<1x128xf32> to vector<2x128xf32>
    %19 = arith.addf %17, %18 : vector<2x128xf32>
    %c0_13 = arith.constant 0 : index
    %c0_14 = arith.constant 0 : index
    %20 = vector.load %arg7[%c0_13, %c0_14] : memref<2x128xf32, #tpu.memory_space<vmem>>, vector<2x128xf32>
    tpu.vector_store %arg7[%c0_13, %c0_14], %19 {strides = array<i32>} : memref<2x128xf32, #tpu.memory_space<vmem>>, vector<2x128xf32>,
    return
  }
  func.func @transform_0(%arg0: i32) -> (i32, i32) {
    %c0_i32 = arith.constant 0 : i32
    %c0_i32_0 = arith.constant 0 : i32
    %c0_i32_1 = arith.constant 0 : i32
    return %c0_i32, %c0_i32_0 : i32, i32
  }
  func.func @transform_1(%arg0: i32) -> (i32, i32) {
    %c0_i32 = arith.constant 0 : i32
    %c0_i32_0 = arith.constant 0 : i32
    %c0_i32_1 = arith.constant 0 : i32
    return %c0_i32, %c0_i32_0 : i32, i32
  }
  func.func @transform_2(%arg0: i32) -> (i32, i32) {
    %c0_i32 = arith.constant 0 : i32
    %c0_i32_0 = arith.constant 0 : i32
    %c0_i32_1 = arith.constant 0 : i32
    return %c0_i32, %c0_i32_0 : i32, i32
  }
  func.func @transform_3(%arg0: i32) -> (i32, i32) {
    %c0_i32 = arith.constant 0 : i32
    %c0_i32_0 = arith.constant 0 : i32
    %c0_i32_1 = arith.constant 0 : i32
    return %c0_i32, %c0_i32_0 : i32, i32
  }
  func.func @transform_4(%arg0: i32) -> (i32, i32) {
    %c0_i32 = arith.constant 0 : i32
    %c0_i32_0 = arith.constant 0 : i32
    %c0_i32_1 = arith.constant 0 : i32
    return %c0_i32, %c0_i32_0 : i32, i32
  }
  func.func @transform_5(%arg0: i32) -> (i32, i32) {
    %c0_i32 = arith.constant 0 : i32
    %c0_i32_0 = arith.constant 0 : i32
    %c0_i32_1 = arith.constant 0 : i32
    return %c0_i32, %c0_i32_0 : i32, i32
  }
  func.func @transform_6(%arg0: i32) -> (i32, i32) {
    %c0_i32 = arith.constant 0 : i32
    %c0_i32_0 = arith.constant 0 : i32
    %c0_i32_1 = arith.constant 0 : i32
    return %c0_i32, %c0_i32_0 : i32, i32
  }
}

</mosaic_0001>

<bundles_post_ra>
// kernel: combined_unet_forward.1
= control target key start
LH: loop header
LB: loop body
LE: loop exit
PB: predicated region body
PF: predicated region fallthrough
CT: control target
= control target key end

     0   :  { %11 = vsyncpa [#allocation3], 0  ;;  %s2269_s0 = inlined_call_operand.vmem [shape: f32[2,1024], index: 0, kind: input, shape index: {}]   ;;  %s2270_s1 = inlined_call_operand.vmem [shape: f32[2,1024], index: 1, kind: input, shape index: {}]   ;;  %s2271_s2 = inlined_call_operand.vmem [shape: f32[2,1024], index: 2, kind: input, shape index: {}]   ;;  %s2272_s3 = inlined_call_operand.hbm [shape: bf16[2048,128], index: 3, kind: input, shape index: {}]   ;;  %s2273_s4 = inlined_call_operand.vmem [shape: f32[1,1024], index: 4, kind: input, shape index: {}]   ;;  %s2274_s5 = inlined_call_operand.vmem [shape: f32[2,128], index: 5, kind: input, shape index: {}]   ;;  %s2275_s6 = inlined_call_operand.hbm [shape: f32[2,128], index: 6, kind: output, shape index: {}]  }
   0x1   :  { %12 = vsyncpa [#allocation4], 0  ;;  %s23_s23 = sshll.u32 %s2272_s3, 4  ;;  %s2125_s24 = smov [#allocation2]   ;;  %s24_s23 = int_to_ptr.hbm [resolvable:$true] %s23_s23 }
   0x2   :  { %s25_s25 = sshll.u32 %s2125_s24, 4  ;;  %s2126_s26 = smov 64   ;;  %s26_s25 = int_to_ptr.vmem [resolvable:$true] %s25_s25 }
   0x3   :  { %s2127_s27 = smov 4  }
   0x4   :  { %31 = dma.hbm_to_vmem [thread:$0]  %s24_s23, 16384, %s26_s25, [#allocation3], %s2126_s26, %s2126_s26, %s2127_s27  }
   0x5   :  { %2121 = dma.done.wait [#allocation3], 16384  }
   0x6   :  { %2122 = vsyncadd [#allocation3], 4294950912  ;;  %v1946_v0 = vld [vmem:[#allocation2 + $0x38] sm:$0xff]  ;;  %v1945_v4 = vld [vmem:[#allocation2 + $0x30] sm:$0xff]  ;;  %vm376_vm0 = vcmask 1041408   ;;  %vm378_vm1 = vcmask 1045508  }
   0x7   :  { %v1954_v1 = vld [vmem:[#allocation2 + $0x78] sm:$0xff]  ;;  %1199 = vmatpush.bf16.msra.mxu0 %v1946_v0  ;;  %v1953_v5 = vld [vmem:[#allocation2 + $0x70] sm:$0xff]  ;;  %v1944_v8 = vld [vmem:[#allocation2 + $0x28] sm:$0xff]  ;;  %vm380_vm2 = vcmask 1043456   ;;  %s2128_s17 = smov [#allocation5]   ;;  %s1417_s21 = sshll.u32 %s2275_s6, 4  ;;  %s1418_s21 = int_to_ptr.hbm [resolvable:$true] %s1417_s21 }
   0x8   :  { %v1962_v2 = vld [vmem:[#allocation2 + $0xb8] sm:$0xff]  ;;  %1212 = vmatpush.bf16.msra.mxu1 %v1954_v1  ;;  %v1961_v6 = vld [vmem:[#allocation2 + $0xb0] sm:$0xff]  ;;  %v1952_v9 = vld [vmem:[#allocation2 + $0x68] sm:$0xff]  ;;  %s1415_s18 = sshll.u32 %s2128_s17, 4  ;;  %s1416_s18 = int_to_ptr.vmem [resolvable:$true] %s1415_s18 }
   0x9   :  { %v1970_v3 = vld [vmem:[#allocation2 + $0xf8] sm:$0xff]  ;;  %1225 = vmatpush.bf16.msra.mxu2 %v1962_v2  ;;  %v1969_v7 = vld [vmem:[#allocation2 + $0xf0] sm:$0xff]  ;;  %v1960_v10 = vld [vmem:[#allocation2 + $0xa8] sm:$0xff] }
   0xa   :  { %1238 = vmatpush.bf16.msra.mxu3 %v1970_v3  ;;  %v1968_v11 = vld [vmem:[#allocation2 + $0xe8] sm:$0xff]  ;;  %v1943_v12 = vld [vmem:[#allocation2 + $0x20] sm:$0xff]  ;;  %v1942_v16 = vld [vmem:[#allocation2 + $0x18] sm:$0xff] }
   0xb   :  { %1200 = vmatpush.bf16.msra.mxu0 %v1945_v4  ;;  %v1951_v13 = vld [vmem:[#allocation2 + $0x60] sm:$0xff]  ;;  %v1950_v17 = vld [vmem:[#allocation2 + $0x58] sm:$0xff]  ;;  %v1941_v21 = vld [vmem:[#allocation2 + $0x10] sm:$0xff] }
   0xc   :  { %1213 = vmatpush.bf16.msra.mxu1 %v1953_v5  ;;  %v1959_v14 = vld [vmem:[#allocation2 + $0xa0] sm:$0xff]  ;;  %v1958_v18 = vld [vmem:[#allocation2 + $0x98] sm:$0xff]  ;;  %v1949_v22 = vld [vmem:[#allocation2 + $0x50] sm:$0xff] }
   0xd   :  { %1226 = vmatpush.bf16.msra.mxu2 %v1961_v6  ;;  %v1967_v15 = vld [vmem:[#allocation2 + $0xe0] sm:$0xff]  ;;  %v1966_v19 = vld [vmem:[#allocation2 + $0xd8] sm:$0xff]  ;;  %v1957_v24 = vld [vmem:[#allocation2 + $0x90] sm:$0xff] }
   0xe   :  { %1239 = vmatpush.bf16.msra.mxu3 %v1969_v7  ;;  %v40_v20 = vld [vmem:[%s2269_s0] sm:$0xff]  ;;  %v41_v23 = vld [vmem:[%s2269_s0 + $0x8] sm:$0xff]  ;;  %v1965_v25 = vld [vmem:[#allocation2 + $0xd0] sm:$0xff] }
   0xf   :  { %1201 = vmatpush.bf16.msra.mxu0 %v1944_v8  ;;  %46 = vst [vmem:[#allocation1] ss:$4 sm:$0xff] %v40_v20  ;;  %v2176_v26 = vld [vmem:[%s2273_s4] sm:$0xff]  ;;  %v1940_v27 = vld [vmem:[#allocation2 + $0x8] sm:$0xff]  ;;  %v1939_v41 = vld [vmem:[#allocation2] sm:$0xff] }
  0x10   :  { %1214 = vmatpush.bf16.msra.mxu1 %v1952_v9  ;;  %48 = vst [vmem:[#allocation1 + $0x20] ss:$4 sm:$0xff] %v41_v23  ;;  %v1948_v28 = vld [vmem:[#allocation2 + $0x48] sm:$0xff]  ;;  %v363_v29 = vperm.slane %v2176_v26, 1  ;;  %v364_v30 = vperm.slane %v2176_v26, 2  ;;  %v365_v31 = vperm.slane %v2176_v26, 3 }
  0x11   :  { %1227 = vmatpush.bf16.msra.mxu2 %v1960_v10  ;;  %v362_v32 = vperm.slane %v2176_v26, 0  ;;  %v367_v33 = vperm.slane %v2176_v26, 5  ;;  %v368_v34 = vperm.slane %v2176_v26, 6  ;;  %v1956_v35 = vld [vmem:[#allocation2 + $0x88] sm:$0xff]  ;;  %v369_v37 = vperm.slane %v2176_v26, 7  ;;  %v1947_v42 = vld [vmem:[#allocation2 + $0x40] sm:$0xff] }
  0x12   :  { %1240 = vmatpush.bf16.msra.mxu3 %v1968_v11  ;;  %v1964_v36 = vld [vmem:[#allocation2 + $0xc8] sm:$0xff]  ;;  %v370_v38 = vrot.slane %v363_v29, 6  ;;  %v371_v39 = vrot.slane %v364_v30, 4  ;;  %v372_v40 = vrot.slane %v365_v31, 2  ;;  %v42_v43 = vld [vmem:[%s2270_s1] sm:$0xff]  ;;  %v1955_v44 = vld [vmem:[#allocation2 + $0x80] sm:$0xff] }
  0x13   :  { %1202 = vmatpush.bf16.msra.mxu0 %v1943_v12  ;;  %v1963_v45 = vld [vmem:[#allocation2 + $0xc0] sm:$0xff]  ;;  %v1978_v48 = vld [vmem:[#allocation2 + $0x138] sm:$0xff]  ;;  %v366_v53 = vperm.slane %v2176_v26, 4  ;;  %v373_v54 = vrot.slane %v367_v33, 6  ;;  %v374_v55 = vrot.slane %v368_v34, 4  ;;  %v375_v56 = vrot.slane %v369_v37, 2 }
  0x14   :  { %1215 = vmatpush.bf16.msra.mxu1 %v1951_v13  ;;  %v377_v51 = vsel %vm376_vm0, %v362_v32, %v370_v38  ;;  %v379_v52 = vsel %vm378_vm1, %v371_v39, %v372_v40  ;;  %v1986_v57 = vld [vmem:[#allocation2 + $0x178] sm:$0xff]  ;;  %v43_v60 = vld [vmem:[%s2270_s1 + $0x8] sm:$0xff]  ;;  %v1977_v9 = vld [vmem:[#allocation2 + $0x130] sm:$0xff] }
  0x15   :  { %1228 = vmatpush.bf16.msra.mxu2 %v1959_v14  ;;  %v1994_v58 = vld [vmem:[#allocation2 + $0x1b8] sm:$0xff]  ;;  %v381_v63 = vsel %vm380_vm2, %v377_v51, %v379_v52  ;;  %v382_v7 = vsel %vm376_vm0, %v366_v53, %v373_v54  ;;  %v383_v8 = vsel %vm378_vm1, %v374_v55, %v375_v56  ;;  %v1985_v10 = vld [vmem:[#allocation2 + $0x170] sm:$0xff]  ;;  %v359_v14 = vld [vmem:[%s2271_s2 + $0x8] sm:$0xff] }
  0x16   :  { %1241 = vmatpush.bf16.msra.mxu3 %v1967_v15  ;;  %v51_v46 = vld.sshfl [vmem:[#allocation1 + $0x10] sm:$0xff pattern:$0x73625140]  ;;  %v49_v47 = vld.sshfl [vmem:[#allocation1] sm:$0xff pattern:$0x73625140] }
  0x17   :  { %1203 = vmatpush.bf16.msra.mxu0 %v1942_v16  ;;  %v52_v49 = vld.sshfl [vmem:[#allocation1 + $0x18] sm:$0xff pattern:$0x73625140]  ;;  %v50_v50 = vld.sshfl [vmem:[#allocation1 + $0x8] sm:$0xff pattern:$0x73625140]  ;;  %v88_v0 = vpack.c.bf16 %v51_v46, %v51_v46  ;;  %v86_v1 = vpack.c.bf16 %v49_v47, %v49_v47 }
  0x18   :  { %1216 = vmatpush.bf16.msra.mxu1 %v1950_v17  ;;  %67 = vst [vmem:[#allocation1] ss:$4 sm:$0xff] %v42_v43  ;;  %v2002_v59 = vld [vmem:[#allocation2 + $0x1f8] sm:$0xff]  ;;  %v89_v2 = vpack.c.bf16 %v52_v49, %v52_v49  ;;  %v2200_v3 = vld.sshfl [vmem:[#allocation1 + $0x28] sm:$0xff pattern:$0x73625140]  ;;  %v87_v5 = vpack.c.bf16 %v50_v50, %v50_v50  ;;  %v384_v17 = vsel %vm380_vm2, %v382_v7, %v383_v8 }
  0x19   :  { %1229 = vmatpush.bf16.msra.mxu2 %v1958_v18  ;;  %v2194_v61 = vld.sshfl [vmem:[#allocation1 + $0x20] sm:$0xff pattern:$0x73625140]  ;;  %v2202_v4 = vld.sshfl [vmem:[#allocation1 + $0x30] sm:$0xff pattern:$0x73625140] }
  0x1a   :  { %1242 = vmatpush.bf16.msra.mxu3 %v1966_v19  ;;  %v358_v62 = vld [vmem:[%s2271_s2] sm:$0xff]  ;;  %v2204_v6 = vld.sshfl [vmem:[#allocation1 + $0x38] sm:$0xff pattern:$0x73625140]  ;;  %v1976_v20 = vld [vmem:[#allocation2 + $0x128] sm:$0xff] }
  0x1b   :  { %1204 = vmatpush.bf16.msra.mxu0 %v1941_v21  ;;  %69 = vst [vmem:[#allocation1 + $0x20] ss:$4 sm:$0xff] %v43_v60  ;;  %v387_v11 = vmul.f32 %v381_v63, %v358_v62  ;;  %v1993_v12 = vld [vmem:[#allocation2 + $0x1b0] sm:$0xff]  ;;  %v1984_v21 = vld [vmem:[#allocation2 + $0x168] sm:$0xff]  ;;  %v1983_v26 = vld [vmem:[#allocation2 + $0x160] sm:$0xff] }
  0x1c   :  { %1217 = vmatpush.bf16.msra.mxu1 %v1949_v22  ;;  %v2001_v13 = vld [vmem:[#allocation2 + $0x1f0] sm:$0xff]  ;;  %v1992_v22 = vld [vmem:[#allocation2 + $0x1a8] sm:$0xff]  ;;  %v1991_v31 = vld [vmem:[#allocation2 + $0x1a0] sm:$0xff] }
  0x1d   :  { %1230 = vmatpush.bf16.msra.mxu2 %v1957_v24  ;;  %v2000_v23 = vld [vmem:[#allocation2 + $0x1e8] sm:$0xff]  ;;  %v388_v24 = vmul.f32 %v384_v17, %v359_v14  ;;  %v1999_v32 = vld [vmem:[#allocation2 + $0x1e0] sm:$0xff]  ;;  %v1974_v33 = vld [vmem:[#allocation2 + $0x118] sm:$0xff]  ;;  %v92_v17 = vpack.c.bf16 %v2202_v4, %v2202_v4  ;;  %v91_v4 = vpack.c.bf16 %v2200_v3, %v2200_v3 }
  0x1e   :  { %1243 = vmatpush.bf16.msra.mxu3 %v1965_v25  ;;  %v1975_v25 = vld [vmem:[#allocation2 + $0x120] sm:$0xff]  ;;  %v1982_v34 = vld [vmem:[#allocation2 + $0x158] sm:$0xff]  ;;  %v1981_v46 = vld [vmem:[#allocation2 + $0x150] sm:$0xff] }
  0x1f   :  { %1205 = vmatpush.bf16.msra.mxu0 %v1940_v27  ;;  %v2211_v15 = vld.sshfl [vmem:[#allocation1] sm:$0xff pattern:$0x73625140]  ;;  %v2213_v16 = vld.sshfl [vmem:[#allocation1 + $0x8] sm:$0xff pattern:$0x73625140] }
  0x20   :  { %1218 = vmatpush.bf16.msra.mxu1 %v1948_v28  ;;  %v2216_v18 = vld.sshfl [vmem:[#allocation1 + $0x10] sm:$0xff pattern:$0x73625140]  ;;  %v2218_v19 = vld.sshfl [vmem:[#allocation1 + $0x18] sm:$0xff pattern:$0x73625140] }
  0x21   :  { %1231 = vmatpush.bf16.msra.mxu2 %v1956_v35  ;;  %391 = vst [vmem:[#allocation1] ss:$4 sm:$0xff] %v387_v11  ;;  %v1990_v39 = vld [vmem:[#allocation2 + $0x198] sm:$0xff]  ;;  %v1989_v51 = vld [vmem:[#allocation2 + $0x190] sm:$0xff]  ;;  %v1988_v60 = vld [vmem:[#allocation2 + $0x188] sm:$0xff] }
  0x22   :  { %1244 = vmatpush.bf16.msra.mxu3 %v1964_v36  ;;  %v2220_v27 = vld.sshfl [vmem:[#allocation1 + $0x20] sm:$0xff pattern:$0x73625140]  ;;  %v2222_v28 = vld.sshfl [vmem:[#allocation1 + $0x28] sm:$0xff pattern:$0x73625140] }
  0x23   :  { %1206 = vmatpush.bf16.msra.mxu0 %v1939_v41  ;;  %v2224_v29 = vld.sshfl [vmem:[#allocation1 + $0x30] sm:$0xff pattern:$0x73625140]  ;;  %v2226_v30 = vld.sshfl [vmem:[#allocation1 + $0x38] sm:$0xff pattern:$0x73625140] }
  0x24   :  { %1219 = vmatpush.bf16.msra.mxu1 %v1947_v42  ;;  %393 = vst [vmem:[#allocation1 + $0x20] ss:$4 sm:$0xff] %v388_v24  ;;  %v1998_v40 = vld [vmem:[#allocation2 + $0x1d8] sm:$0xff]  ;;  %v1997_v52 = vld [vmem:[#allocation2 + $0x1d0] sm:$0xff]  ;;  %v1996_v62 = vld [vmem:[#allocation2 + $0x1c8] sm:$0xff] }
  0x25   :  { %1232 = vmatpush.bf16.msra.mxu2 %v1955_v44  ;;  %v1987_v8 = vld [vmem:[#allocation2 + $0x180] sm:$0xff]  ;;  %v2010_v11 = vld [vmem:[#allocation2 + $0x238] sm:$0xff]  ;;  %v2017_v24 = vld [vmem:[#allocation2 + $0x270] sm:$0xff] }
  0x26   :  { %1245 = vmatpush.bf16.msra.mxu3 %v1963_v45  ;;  %1207 = vmatmul.bf16.vlgmr.msra.gmra.mxu0 %v86_v1  ;;  %v1973_v45 = vld [vmem:[#allocation2 + $0x110] sm:$0xff]  ;;  %v2034_v14 = vld [vmem:[#allocation2 + $0x2f8] sm:$0xff] }
  0x27   :  { %1251 = vmatpush.bf16.msrb.mxu0 %v1978_v48  ;;  %1220 = vmatmul.bf16.vlgmr.msra.gmra.mxu1 %v87_v5  ;;  %v1979_v5 = vld [vmem:[#allocation2 + $0x140] sm:$0xff]  ;;  %v2006_v3 = vld [vmem:[#allocation2 + $0x218] sm:$0xff] }
  0x28   :  { %1264 = vmatpush.bf16.msrb.mxu1 %v1986_v57  ;;  %1233 = vmatmul.bf16.vlgmr.msra.gmra.mxu2 %v88_v0  ;;  %v394_v35 = vld.sshfl [vmem:[#allocation1] sm:$0xff pattern:$0x73625140]  ;;  %v395_v36 = vld.sshfl [vmem:[#allocation1 + $0x8] sm:$0xff pattern:$0x73625140] }
  0x29   :  { %1277 = vmatpush.bf16.msrb.mxu2 %v1994_v58  ;;  %1246 = vmatmul.bf16.vlgmr.msra.gmra.mxu3 %v89_v2  ;;  %v396_v37 = vld.sshfl [vmem:[#allocation1 + $0x10] sm:$0xff pattern:$0x73625140]  ;;  %v397_v38 = vld.sshfl [vmem:[#allocation1 + $0x18] sm:$0xff pattern:$0x73625140] }
  0x2a   :  { %1290 = vmatpush.bf16.msrb.mxu3 %v2002_v59  ;;  %v410_v41 = vsel %vm376_vm0, %v394_v35, 0.0  ;;  %v411_v42 = vsel %vm376_vm0, %v395_v36, 0.0  ;;  %v413_v43 = vsel %vm376_vm0, %v396_v37, 0.0  ;;  %v415_v47 = vsel %vm376_vm0, %v397_v38, 0.0  ;;  %v1972_v57 = vld [vmem:[#allocation2 + $0x108] sm:$0xff]  ;;  %v1971_v2 = vld [vmem:[#allocation2 + $0x100] sm:$0xff] }
  0x2b   :  { %1252 = vmatpush.bf16.msrb.mxu0 %v1977_v9  ;;  %v412_v44 = vadd.f32 %v411_v42, %v410_v41  ;;  %v398_v48 = vld.sshfl [vmem:[#allocation1 + $0x20] sm:$0xff pattern:$0x73625140]  ;;  %v399_v49 = vld.sshfl [vmem:[#allocation1 + $0x28] sm:$0xff pattern:$0x73625140] }
  0x2c   :  { %1265 = vmatpush.bf16.msrb.mxu1 %v1985_v10  ;;  %v400_v53 = vld.sshfl [vmem:[#allocation1 + $0x30] sm:$0xff pattern:$0x73625140]  ;;  %v417_v55 = vsel %vm376_vm0, %v398_v48, 0.0  ;;  %v419_v56 = vsel %vm376_vm0, %v399_v49, 0.0  ;;  %v1995_v9 = vld [vmem:[#allocation2 + $0x1c0] sm:$0xff] }
  0x2d   :  { %1278 = vmatpush.bf16.msrb.mxu2 %v1993_v12  ;;  %v414_v50 = vadd.f32 %v413_v43, %v412_v44  ;;  %v1980_v58 = vld [vmem:[#allocation2 + $0x148] sm:$0xff]  ;;  %v421_v63 = vsel %vm376_vm0, %v400_v53, 0.0  ;;  %v401_v0 = vld.sshfl [vmem:[#allocation1 + $0x38] sm:$0xff pattern:$0x73625140]  ;;  %v2018_v12 = vld [vmem:[#allocation2 + $0x278] sm:$0xff] }
  0x2e   :  { %1291 = vmatpush.bf16.msrb.mxu3 %v2001_v13  ;;  %v423_v10 = vsel %vm376_vm0, %v401_v0, 0.0  ;;  %v2026_v13 = vld [vmem:[#allocation2 + $0x2b8] sm:$0xff]  ;;  %v2023_v35 = vld [vmem:[#allocation2 + $0x2a0] sm:$0xff]  ;;  %v2013_v41 = vld [vmem:[#allocation2 + $0x250] sm:$0xff] }
  0x2f   :  { %1253 = vmatpush.bf16.msrb.mxu0 %v1976_v20  ;;  %v416_v54 = vadd.f32 %v415_v47, %v414_v50  ;;  %v2031_v36 = vld [vmem:[#allocation2 + $0x2e0] sm:$0xff]  ;;  %v2014_v37 = vld [vmem:[#allocation2 + $0x258] sm:$0xff]  ;;  %v2021_v42 = vld [vmem:[#allocation2 + $0x290] sm:$0xff] }
  0x30   :  { %1266 = vmatpush.bf16.msrb.mxu1 %v1984_v21  ;;  %v90_v21 = vpack.c.bf16 %v2194_v61, %v2194_v61  ;;  %v2008_v61 = vld [vmem:[#allocation2 + $0x228] sm:$0xff]  ;;  %v2022_v38 = vld [vmem:[#allocation2 + $0x298] sm:$0xff]  ;;  %v2029_v43 = vld [vmem:[#allocation2 + $0x2d0] sm:$0xff] }
  0x31   :  { %1279 = vmatpush.bf16.msrb.mxu2 %v1992_v22  ;;  %v418_v59 = vadd.f32 %v417_v55, %v416_v54  ;;  %v93_v22 = vpack.c.bf16 %v2204_v6, %v2204_v6  ;;  %v2024_v6 = vld [vmem:[#allocation2 + $0x2a8] sm:$0xff]  ;;  %v2003_v48 = vld [vmem:[#allocation2 + $0x200] sm:$0xff]  ;;  %v2050_v53 = vld [vmem:[#allocation2 + $0x378] sm:$0xff] }
  0x32   :  { %1292 = vmatpush.bf16.msrb.mxu3 %v2000_v23  ;;  %v2009_v23 = vld [vmem:[#allocation2 + $0x230] sm:$0xff]  ;;  %v2004_v44 = vld [vmem:[#allocation2 + $0x208] sm:$0xff]  ;;  %v2011_v49 = vld [vmem:[#allocation2 + $0x240] sm:$0xff] }
  0x33   :  { %1254 = vmatpush.bf16.msrb.mxu0 %v1975_v25  ;;  %v420_v1 = vadd.f32 %v419_v56, %v418_v59  ;;  %v2025_v25 = vld [vmem:[#allocation2 + $0x2b0] sm:$0xff]  ;;  %v2028_v47 = vld [vmem:[#allocation2 + $0x2c8] sm:$0xff]  ;;  %v2019_v50 = vld [vmem:[#allocation2 + $0x280] sm:$0xff]  ;;  %v94_v56 = vpack.c.bf16 %v2211_v15, %v2211_v15  ;;  %v97_v59 = vpack.c.bf16 %v2218_v19, %v2218_v19 }
  0x34   :  { %1267 = vmatpush.bf16.msrb.mxu1 %v1983_v26  ;;  %v2033_v26 = vld [vmem:[#allocation2 + $0x2f0] sm:$0xff]  ;;  %v2058_v54 = vld [vmem:[#allocation2 + $0x3b8] sm:$0xff]  ;;  %v2040_v15 = vld [vmem:[#allocation2 + $0x328] sm:$0xff] }
  0x35   :  { %1280 = vmatpush.bf16.msrb.mxu2 %v1991_v31  ;;  %v422_v7 = vadd.f32 %v421_v63, %v420_v1  ;;  %v2016_v31 = vld [vmem:[#allocation2 + $0x268] sm:$0xff]  ;;  %v2066_v55 = vld [vmem:[#allocation2 + $0x3f8] sm:$0xff]  ;;  %v2057_v63 = vld [vmem:[#allocation2 + $0x3b0] sm:$0xff] }
  0x36   :  { %1293 = vmatpush.bf16.msrb.mxu3 %v1999_v32  ;;  %v2032_v32 = vld [vmem:[#allocation2 + $0x2e8] sm:$0xff]  ;;  %v2065_v0 = vld [vmem:[#allocation2 + $0x3f0] sm:$0xff]  ;;  %v2039_v1 = vld [vmem:[#allocation2 + $0x320] sm:$0xff] }
  0x37   :  { %1255 = vmatpush.bf16.msrb.mxu0 %v1974_v33  ;;  %v424_v20 = vadd.f32 %v423_v10, %v422_v7  ;;  %v2007_v33 = vld [vmem:[#allocation2 + $0x220] sm:$0xff]  ;;  %v2064_v19 = vld [vmem:[#allocation2 + $0x3e8] sm:$0xff]  ;;  %v2054_v10 = vld [vmem:[#allocation2 + $0x398] sm:$0xff] }
  0x38   :  { %1268 = vmatpush.bf16.msrb.mxu1 %v1982_v34  ;;  %v2015_v34 = vld [vmem:[#allocation2 + $0x260] sm:$0xff] }
  0x39   :  { %1281 = vmatpush.bf16.msrb.mxu2 %v1990_v39  ;;  %425 = vadd.xlane.f32.xlu0 %v424_v20  ;;  %v2030_v39 = vld [vmem:[#allocation2 + $0x2d8] sm:$0xff]  ;;  %v2063_v7 = vld [vmem:[#allocation2 + $0x3e0] sm:$0xff]  ;;  %v2036_v20 = vld [vmem:[#allocation2 + $0x308] sm:$0xff] }
  0x3a   :  { %1294 = vmatpush.bf16.msrb.mxu3 %v1998_v40  ;;  %v2005_v40 = vld [vmem:[#allocation2 + $0x210] sm:$0xff] }
  0x3b   :  { %1256 = vmatpush.bf16.msrb.mxu0 %v1973_v45  ;;  %v2012_v45 = vld [vmem:[#allocation2 + $0x248] sm:$0xff] }
  0x3c   :  { %1269 = vmatpush.bf16.msrb.mxu1 %v1981_v46  ;;  %v2020_v46 = vld [vmem:[#allocation2 + $0x288] sm:$0xff] }
  0x3d   :  { %1282 = vmatpush.bf16.msrb.mxu2 %v1989_v51  ;;  %v2027_v51 = vld [vmem:[#allocation2 + $0x2c0] sm:$0xff] }
  0x3e   :  { %1295 = vmatpush.bf16.msrb.mxu3 %v1997_v52  ;;  %v2042_v52 = vld [vmem:[#allocation2 + $0x338] sm:$0xff] }
  0x3f   :  { %1257 = vmatpush.bf16.msrb.mxu0 %v1972_v57  ;;  %v96_v57 = vpack.c.bf16 %v2216_v18, %v2216_v18  ;;  %v2048_v18 = vld [vmem:[#allocation2 + $0x368] sm:$0xff] }
  0x40   :  { %1270 = vmatpush.bf16.msrb.mxu1 %v1980_v58  ;;  %v95_v58 = vpack.c.bf16 %v2213_v16, %v2213_v16  ;;  %v2056_v16 = vld [vmem:[#allocation2 + $0x3a8] sm:$0xff] }
  0x41   :  { %1283 = vmatpush.bf16.msrb.mxu2 %v1988_v60  ;;  %v2041_v60 = vld [vmem:[#allocation2 + $0x330] sm:$0xff] }
  0x42   :  { %1296 = vmatpush.bf16.msrb.mxu3 %v1996_v62  ;;  %v2049_v62 = vld [vmem:[#allocation2 + $0x370] sm:$0xff] }
  0x43   :  { %1258 = vmatpush.bf16.msrb.mxu0 %v1971_v2  ;;  %v2047_v2 = vld [vmem:[#allocation2 + $0x360] sm:$0xff] }
  0x44   :  { %1271 = vmatpush.bf16.msrb.mxu1 %v1979_v5  ;;  %v2055_v5 = vld [vmem:[#allocation2 + $0x3a0] sm:$0xff] }
  0x45   :  { %1284 = vmatpush.bf16.msrb.mxu2 %v1987_v8  ;;  %v2038_v8 = vld [vmem:[#allocation2 + $0x318] sm:$0xff] }
  0x46   :  { %1297 = vmatpush.bf16.msrb.mxu3 %v1995_v9  ;;  %1259 = vmatmul.bf16.vlgmr.msrb.gmra.mxu0 %v90_v21  ;;  %v2046_v9 = vld [vmem:[#allocation2 + $0x358] sm:$0xff]  ;;  %v2044_v21 = vld [vmem:[#allocation2 + $0x348] sm:$0xff] }
  0x47   :  { %1303 = vmatpush.bf16.msra.mxu0 %v2010_v11  ;;  %1272 = vmatmul.bf16.vlgmr.msrb.gmra.mxu1 %v91_v4  ;;  %v2062_v11 = vld [vmem:[#allocation2 + $0x3d8] sm:$0xff]  ;;  %v2059_v4 = vld [vmem:[#allocation2 + $0x3c0] sm:$0xff] }
  0x48   :  { %1316 = vmatpush.bf16.msra.mxu1 %v2018_v12  ;;  %1285 = vmatmul.bf16.vlgmr.msrb.gmra.mxu2 %v92_v17  ;;  %v2037_v12 = vld [vmem:[#allocation2 + $0x310] sm:$0xff] }
  0x49   :  { %1329 = vmatpush.bf16.msra.mxu2 %v2026_v13  ;;  %1298 = vmatmul.bf16.vlgmr.msrb.gmra.mxu3 %v93_v22  ;;  %v2045_v13 = vld [vmem:[#allocation2 + $0x350] sm:$0xff]  ;;  %v2052_v22 = vld [vmem:[#allocation2 + $0x388] sm:$0xff] }
  0x4a   :  { %1342 = vmatpush.bf16.msra.mxu3 %v2034_v14  ;;  %v2053_v14 = vld [vmem:[#allocation2 + $0x390] sm:$0xff] }
  0x4b   :  { %1304 = vmatpush.bf16.msra.mxu0 %v2009_v23  ;;  %v2061_v17 = vld [vmem:[#allocation2 + $0x3d0] sm:$0xff]  ;;  %v2060_v23 = vld [vmem:[#allocation2 + $0x3c8] sm:$0xff] }
  0x4c   :  { %1317 = vmatpush.bf16.msra.mxu1 %v2017_v24  ;;  %v2035_v24 = vld [vmem:[#allocation2 + $0x300] sm:$0xff] }
  0x4d   :  { %1330 = vmatpush.bf16.msra.mxu2 %v2025_v25  ;;  %v2043_v25 = vld [vmem:[#allocation2 + $0x340] sm:$0xff] }
  0x4e   :  { %1343 = vmatpush.bf16.msra.mxu3 %v2033_v26  ;;  %v2051_v26 = vld [vmem:[#allocation2 + $0x380] sm:$0xff] }
  0x4f   :  { %1305 = vmatpush.bf16.msra.mxu0 %v2008_v61  ;;  %v98_v61 = vpack.c.bf16 %v2220_v27, %v2220_v27 }
  0x50   :  { %1318 = vmatpush.bf16.msra.mxu1 %v2016_v31  ;;  %v99_v31 = vpack.c.bf16 %v2222_v28, %v2222_v28 }
  0x51   :  { %1331 = vmatpush.bf16.msra.mxu2 %v2024_v6  ;;  %v100_v6 = vpack.c.bf16 %v2224_v29, %v2224_v29  ;;  %v2071_v29 = vld [vmem:[%s2274_s5] ss:$0 sm:$0xff] }
  0x52   :  { %1344 = vmatpush.bf16.msra.mxu3 %v2032_v32  ;;  %v101_v32 = vpack.c.bf16 %v2226_v30, %v2226_v30 }
  0x53   :  { %1306 = vmatpush.bf16.msra.mxu0 %v2007_v33 }
  0x54   :  { %1319 = vmatpush.bf16.msra.mxu1 %v2015_v34 }
  0x55   :  { %1332 = vmatpush.bf16.msra.mxu2 %v2023_v35 }
  0x56   :  { %1345 = vmatpush.bf16.msra.mxu3 %v2031_v36 }
  0x57   :  { %1307 = vmatpush.bf16.msra.mxu0 %v2006_v3 }
  0x58   :  { %1320 = vmatpush.bf16.msra.mxu1 %v2014_v37 }
  0x59   :  { %1333 = vmatpush.bf16.msra.mxu2 %v2022_v38 }
  0x5a   :  { %1346 = vmatpush.bf16.msra.mxu3 %v2030_v39 }
  0x5b   :  { %1308 = vmatpush.bf16.msra.mxu0 %v2005_v40 }
  0x5c   :  { %1321 = vmatpush.bf16.msra.mxu1 %v2013_v41 }
  0x5d   :  { %1334 = vmatpush.bf16.msra.mxu2 %v2021_v42 }
  0x5e   :  { %1347 = vmatpush.bf16.msra.mxu3 %v2029_v43 }
  0x5f   :  { %1309 = vmatpush.bf16.msra.mxu0 %v2004_v44 }
  0x60   :  { %1322 = vmatpush.bf16.msra.mxu1 %v2012_v45 }
  0x61   :  { %1335 = vmatpush.bf16.msra.mxu2 %v2020_v46 }
  0x62   :  { %1348 = vmatpush.bf16.msra.mxu3 %v2028_v47 }
  0x63   :  { %1310 = vmatpush.bf16.msra.mxu0 %v2003_v48 }
  0x64   :  { %1323 = vmatpush.bf16.msra.mxu1 %v2011_v49 }
  0x65   :  { %1336 = vmatpush.bf16.msra.mxu2 %v2019_v50 }
  0x66   :  { %1349 = vmatpush.bf16.msra.mxu3 %v2027_v51  ;;  %1311 = vmatmul.bf16.vlgmr.msra.gmra.mxu0 %v94_v56 }
  0x67   :  { %1355 = vmatpush.bf16.msrb.mxu0 %v2042_v52  ;;  %1324 = vmatmul.bf16.vlgmr.msra.gmra.mxu1 %v95_v58 }
  0x68   :  { %1368 = vmatpush.bf16.msrb.mxu1 %v2050_v53  ;;  %1337 = vmatmul.bf16.vlgmr.msra.gmra.mxu2 %v96_v57 }
  0x69   :  { %1381 = vmatpush.bf16.msrb.mxu2 %v2058_v54  ;;  %1350 = vmatmul.bf16.vlgmr.msra.gmra.mxu3 %v97_v59 }
  0x6a   :  { %1394 = vmatpush.bf16.msrb.mxu3 %v2066_v55 }
  0x6b   :  { %1356 = vmatpush.bf16.msrb.mxu0 %v2041_v60 }
  0x6c   :  { %1369 = vmatpush.bf16.msrb.mxu1 %v2049_v62 }
  0x6d   :  { %1382 = vmatpush.bf16.msrb.mxu2 %v2057_v63 }
  0x6e   :  { %1395 = vmatpush.bf16.msrb.mxu3 %v2065_v0 }
  0x6f   :  { %1357 = vmatpush.bf16.msrb.mxu0 %v2040_v15 }
  0x70   :  { %1370 = vmatpush.bf16.msrb.mxu1 %v2048_v18 }
  0x71   :  { %1383 = vmatpush.bf16.msrb.mxu2 %v2056_v16 }
  0x72   :  { %1396 = vmatpush.bf16.msrb.mxu3 %v2064_v19 }
  0x73   :  { %1358 = vmatpush.bf16.msrb.mxu0 %v2039_v1 }
  0x74   :  { %1371 = vmatpush.bf16.msrb.mxu1 %v2047_v2 }
  0x75   :  { %1384 = vmatpush.bf16.msrb.mxu2 %v2055_v5 }
  0x76   :  { %1397 = vmatpush.bf16.msrb.mxu3 %v2063_v7 }
  0x77   :  { %1359 = vmatpush.bf16.msrb.mxu0 %v2038_v8 }
  0x78   :  { %1372 = vmatpush.bf16.msrb.mxu1 %v2046_v9 }
  0x79   :  { %1385 = vmatpush.bf16.msrb.mxu2 %v2054_v10  ;;  %v2072_v10 = vld [vmem:[%s2274_s5 + $0x1] ss:$0 sm:$0xff] }
  0x7a   :  { %1398 = vmatpush.bf16.msrb.mxu3 %v2062_v11 }
  0x7b   :  { %1360 = vmatpush.bf16.msrb.mxu0 %v2037_v12 }
  0x7c   :  { %1373 = vmatpush.bf16.msrb.mxu1 %v2045_v13 }
  0x7d   :  { %1386 = vmatpush.bf16.msrb.mxu2 %v2053_v14 }
  0x7e   :  { %1399 = vmatpush.bf16.msrb.mxu3 %v2061_v17 }
  0x7f   :  { %1361 = vmatpush.bf16.msrb.mxu0 %v2036_v20 }
  0x80   :  { %1374 = vmatpush.bf16.msrb.mxu1 %v2044_v21 }
  0x81   :  { %1387 = vmatpush.bf16.msrb.mxu2 %v2052_v22 }
  0x82   :  { %1400 = vmatpush.bf16.msrb.mxu3 %v2060_v23 }
  0x83   :  { %1362 = vmatpush.bf16.msrb.mxu0 %v2035_v24 }
  0x84   :  { %1375 = vmatpush.bf16.msrb.mxu1 %v2043_v25 }
  0x85   :  { %1388 = vmatpush.bf16.msrb.mxu2 %v2051_v26 }
  0x86   :  { %1401 = vmatpush.bf16.msrb.mxu3 %v2059_v4  ;;  %1363 = vmatmul.bf16.vlgmr.msrb.gmra.mxu0 %v98_v61 }
  0x87   :  { %1376 = vmatmul.bf16.vlgmr.msrb.gmra.mxu1 %v99_v31 }
  0x88   :  { %1389 = vmatmul.bf16.vlgmr.msrb.gmra.mxu2 %v100_v6 }
  0x89   :  { %1402 = vmatmul.bf16.vlgmr.msrb.gmra.mxu3 %v101_v32 }
  0xa3   :  { %v1208_v33 = vpop.f32.mrf.mxu0 }
  0xa4   :  { %v1221_v34 = vpop.f32.mrf.mxu1 }
  0xab   :  { %v1234_v27 = vpop.f32.mrf.mxu2  ;;  %v1210_v36 = vpop.f32.mrf.mxu0 }
  0xac   :  { %v1247_v35 = vpop.f32.mrf.mxu3  ;;  %v1223_v28 = vpop.f32.mrf.mxu1 }
  0xad   :  { %v426_v38 = vpop.xlane.xlu0 %425 }
  0xae   :  { %v430_v30 = vmul.f32 %v2071_v29, %v426_v38 }
  0xb0   :  { %v1209_v39 = vadd.f32 %v1208_v33, %v430_v30 }
  0xb2   :  { %v1222_v40 = vadd.f32 %v1221_v34, %v1209_v39 }
  0xb3   :  { %v1236_v3 = vpop.f32.mrf.mxu2 }
  0xb4   :  { %v1249_v37 = vpop.f32.mrf.mxu3  ;;  %v1235_v41 = vadd.f32 %v1234_v27, %v1222_v40 }
  0xb6   :  { %v1248_v42 = vadd.f32 %v1247_v35, %v1235_v41 }
  0xc3   :  { %v1260_v43 = vpop.f32.mrf.mxu0 }
  0xc4   :  { %v1273_v44 = vpop.f32.mrf.mxu1  ;;  %v1261_v53 = vadd.f32 %v1260_v43, %v1248_v42 }
  0xc6   :  { %v1274_v57 = vadd.f32 %v1273_v44, %v1261_v53 }
  0xcb   :  { %v1286_v45 = vpop.f32.mrf.mxu2  ;;  %v1262_v47 = vpop.f32.mrf.mxu0 }
  0xcc   :  { %v1299_v46 = vpop.f32.mrf.mxu3  ;;  %v1275_v48 = vpop.f32.mrf.mxu1  ;;  %v1287_v59 = vadd.f32 %v1286_v45, %v1274_v57 }
  0xce   :  { %v1300_v63 = vadd.f32 %v1299_v46, %v1287_v59 }
  0xd3   :  { %v1288_v49 = vpop.f32.mrf.mxu2 }
  0xd4   :  { %v1301_v50 = vpop.f32.mrf.mxu3 }
  0xe3   :  { %v1312_v51 = vpop.f32.mrf.mxu0 }
  0xe4   :  { %v1325_v52 = vpop.f32.mrf.mxu1  ;;  %v1313_v0 = vadd.f32 %v1312_v51, %v1300_v63 }
  0xe6   :  { %v1326_v15 = vadd.f32 %v1325_v52, %v1313_v0 }
  0xeb   :  { %v1338_v54 = vpop.f32.mrf.mxu2  ;;  %v1314_v56 = vpop.f32.mrf.mxu0 }
  0xec   :  { %v1351_v55 = vpop.f32.mrf.mxu3  ;;  %v1327_v58 = vpop.f32.mrf.mxu1  ;;  %v1339_v18 = vadd.f32 %v1338_v54, %v1326_v15 }
  0xee   :  { %v1352_v16 = vadd.f32 %v1351_v55, %v1339_v18 }
  0xf3   :  { %v1340_v60 = vpop.f32.mrf.mxu2 }
  0xf4   :  { %v1353_v62 = vpop.f32.mrf.mxu3 }
 0x103   :  { %v1364_v19 = vpop.f32.mrf.mxu0 }
 0x104   :  { %v1377_v1 = vpop.f32.mrf.mxu1  ;;  %v1365_v2 = vadd.f32 %v1364_v19, %v1352_v16 }
 0x106   :  { %v1378_v5 = vadd.f32 %v1377_v1, %v1365_v2 }
 0x10b   :  { %v1390_v7 = vpop.f32.mrf.mxu2  ;;  %v1366_v11 = vpop.f32.mrf.mxu0 }
 0x10c   :  { %v1403_v8 = vpop.f32.mrf.mxu3  ;;  %v1391_v9 = vadd.f32 %v1390_v7, %v1378_v5  ;;  %v1379_v12 = vpop.f32.mrf.mxu1 }
 0x10e   :  { %v1404_v13 = vadd.f32 %v1403_v8, %v1391_v9 }
 0x110   :  { %v1408_v14 = vadd.f32 %v2072_v10, %v1404_v13 }
 0x112   :  { %1409 = vst [vmem:[#allocation5] sm:$0x3] %v1408_v14 }
 0x113   :  { %v1392_v17 = vpop.f32.mrf.mxu2  ;;  %1420 = dma.vmem_to_hbm [thread:$0]  %s1416_s18, 32, %s1418_s21, [#allocation4]  }
 0x114   :  { %v1405_v20 = vpop.f32.mrf.mxu3 }
 0x115   :  { %2123 = dma.done.wait [#allocation4], 32  }
 0x116   :  { %2124 = vsyncadd [#allocation4], 4294967264 }
 0x117   :  { %1425 = vsyncpa [#allocation3], 1 }
 0x118   :  { %1426 = vsyncpa [#allocation4], 1 }

</bundles_post_ra>
